<compile_context>
chip_gen: v7x
topology: tpu7x:2x2x1
jax: 0.10.0
libtpu: 0.0.40
codegen_flags: <defaults>
</compile_context>

<pallas_src>
import functools

import jax
import jax.numpy as jnp
from jax import lax
from jax.experimental import pallas as pl
from jax.experimental.pallas import tpu as pltpu


def _vmem_capacity_bytes():
    """Best-effort physical VMEM capacity; falls back to 128 MiB."""
    try:
        info = pltpu.get_tpu_info()
        cap = getattr(info, "vmem_capacity_bytes", None)
        if cap:
            return int(cap)
    except Exception:
        pass
    return 128 * 1024 * 1024


def _slab_hw_tv(xs, lane_mask, subl_mask, use_roll_w, use_roll_h, H, W):
    """H- and W-direction TV contribution of one (H, W) f32 slab.

    Always returns a full-width (H, W) f32 array (row 0 / column 0 carry no
    H-/W-diff contribution), so the caller never issues partial-width stores.
    """
    out = None
    if W > 1:
        if use_roll_w:
            dw = jnp.abs(xs - pltpu.roll(xs, shift=1, axis=1))
            dw = jnp.where(lane_mask, dw, 0.0)          # mask the wrap column
        else:
            shifted = jnp.concatenate([xs[:, :1], xs[:, : W - 1]], axis=1)
            dw = jnp.abs(xs - shifted)                  # column 0 diffs to 0
        out = dw
    if H > 1:
        if use_roll_h:
            dh = jnp.abs(xs - pltpu.roll(xs, shift=1, axis=0))
            dh = jnp.where(subl_mask, dh, 0.0)          # mask the wrap row
        else:
            shifted = jnp.concatenate([xs[:1, :], xs[: H - 1, :]], axis=0)
            dh = jnp.abs(xs - shifted)                  # row 0 diffs to 0
        out = dh if out is None else out + dh
    if out is None:
        out = jnp.zeros_like(xs)
    return out


def _tv_sse_kernel(x_ref, y_ref, tv_ref, sse_ref,
                   acc_tv_ref, acc_sse_ref, carry_ref,
                   *, d_tile, D, H, W, use_roll_w, use_roll_h, unroll):
    d = pl.program_id(1)
    nd = pl.num_programs(1)
    f32 = jnp.float32
    ragged = (D % d_tile) != 0

    # Hoisted wrap masks for the roll-based shifted diffs (built once per step).
    lane_mask = None
    subl_mask = None
    if use_roll_w and W > 1:
        lane_mask = lax.broadcasted_iota(jnp.int32, (H, W), 1) != 0
    if use_roll_h and H > 1:
        subl_mask = lax.broadcasted_iota(jnp.int32, (H, W), 0) != 0

    # Number of valid depth-slabs in this tile (only the last tile is ragged).
    if ragged:
        valid = jnp.minimum(d_tile, D - d * d_tile)

    # Initialize the carried slab so slab 0's D-diff vanishes on the first tile.
    @pl.when(d == 0)
    def _init_carry():
        carry_ref[...] = x_ref[0].astype(f32)

    def slab_body(i, state):
        step_tv, step_sse, prev = state
        xs = x_ref[i].astype(f32)
        ys = y_ref[i].astype(f32)
        tv = _slab_hw_tv(xs, lane_mask, subl_mask, use_roll_w, use_roll_h, H, W)
        tv = tv + jnp.abs(xs - prev)            # D-direction diff vs previous slab
        err = xs - ys
        sse = err * err
        if ragged:
            keep = i < valid
            tv = jnp.where(keep, tv, 0.0)
            sse = jnp.where(keep, sse, 0.0)
        return step_tv + tv, step_sse + sse, xs

    zero = jnp.zeros((H, W), f32)
    step_tv, step_sse, prev_last = lax.fori_loop(
        0, d_tile, slab_body, (zero, zero, carry_ref[...]), unroll=unroll)

    # Carry the last slab of this tile for the next tile's boundary diff.
    # (For the ragged final tile this value is never consumed.)
    carry_ref[...] = prev_last

    # Exactly one full-width write per accumulator per grid step.
    @pl.when(d == 0)
    def _store_first():
        acc_tv_ref[...] = step_tv
        acc_sse_ref[...] = step_sse

    @pl.when(d > 0)
    def _accumulate():
        acc_tv_ref[...] += step_tv
        acc_sse_ref[...] += step_sse

    # One cross-lane/sublane reduction per batch element, lane-dense output tile.
    @pl.when(d == nd - 1)
    def _finalize():
        tv_ref[...] = jnp.full(tv_ref.shape, jnp.sum(acc_tv_ref[...]), dtype=tv_ref.dtype)
        sse_ref[...] = jnp.full(sse_ref.shape, jnp.sum(acc_sse_ref[...]), dtype=sse_ref.dtype)


def _pick_d_tile(D, H, W, itemsize, target_bytes):
    slab = max(1, H * W * itemsize)
    td = max(1, min(D, target_bytes // slab))
    td = int(min(td, 1024))
    # Prefer a divisor of D in [td/2, td] (no ragged tail / wasted DMA) when one
    # exists; otherwise keep the large tile and mask the ragged last tile.
    lo = max(1, td // 2)
    for t in range(td, lo - 1, -1):
        if D % t == 0:
            return t
    return td


def tv_and_sse_pallas(denoised, noisy, d_tile=None):
    """Returns (tv, sse): per-batch total variation of `denoised` and per-batch
    sum of squared error vs `noisy`, both shape (N,) float32, in one HBM pass."""
    if denoised.ndim != 4:
        raise ValueError(f"Expected 4-D (N, D, H, W) input, got ndim={denoised.ndim}")
    if denoised.shape != noisy.shape:
        raise ValueError("denoised and noisy must have the same shape")
    N, D, H, W = (int(s) for s in denoised.shape)
    itemsize = jnp.dtype(denoised.dtype).itemsize

    # Generation-aware block-size target and VMEM cap.
    vmem_cap = _vmem_capacity_bytes()
    if vmem_cap <= 64 * 1024 * 1024:           # v7x-class: 64 MiB VMEM per TC
        target_block = 5 * 1024 * 1024
        vmem_hard_cap = 56 * 1024 * 1024
    else:                                      # v5e / v6e: 128 MiB VMEM
        target_block = 8 * 1024 * 1024
        vmem_hard_cap = 100 * 1024 * 1024

    if d_tile is None:
        d_tile = _pick_d_tile(D, H, W, itemsize, target_block)
    d_tile = int(max(1, min(int(d_tile), D)))
    nd = pl.cdiv(D, d_tile)

    # Roll (XLU) path only when the f32 slab is vreg-aligned; otherwise the
    # duplicate-edge shift path (still full-width contributions).
    use_roll_w = (W > 1) and (W % 128 == 0)
    use_roll_h = (H > 1) and (H % 8 == 0) and (W % 128 == 0)
    unroll = True if d_tile <= 16 else 4

    # VMEM budget: 2 inputs x double-buffered blocks + f32 (H, W) working set.
    block_bytes = d_tile * H * W * itemsize
    hw_f32 = H * W * 4
    vmem_limit = 2 * 2 * block_bytes + 3 * hw_f32 + 10 * hw_f32
    vmem_limit += 4 * 8 * 128 * 4 + (2 << 20)
    vmem_limit = int(min(max(vmem_limit, 32 << 20), vmem_hard_cap))

    elems = N * D * H * W
    cost = pl.CostEstimate(
        flops=15 * elems,
        transcendentals=0,
        bytes_accessed=2 * elems * itemsize + 2 * N * 8 * 128 * 4,
    )

    kernel = functools.partial(
        _tv_sse_kernel, d_tile=d_tile, D=D, H=H, W=W,
        use_roll_w=use_roll_w, use_roll_h=use_roll_h, unroll=unroll)

    in_spec = pl.BlockSpec((None, d_tile, H, W), lambda n, d: (n, d, 0, 0))
    out_spec = pl.BlockSpec((1, 8, 128), lambda n, d: (n, 0, 0))   # lane-dense output tile

    tv_p, sse_p = pl.pallas_call(
        kernel,
        out_shape=(jax.ShapeDtypeStruct((N, 8, 128), jnp.float32),
                   jax.ShapeDtypeStruct((N, 8, 128), jnp.float32)),
        grid=(N, nd),
        in_specs=[in_spec, in_spec],
        out_specs=(out_spec, out_spec),
        scratch_shapes=[
            pltpu.VMEM((H, W), jnp.float32),   # TV accumulator
            pltpu.VMEM((H, W), jnp.float32),   # SSE accumulator
            pltpu.VMEM((H, W), jnp.float32),   # carried last D-slab of prev tile
        ],
        compiler_params=pltpu.CompilerParams(
            dimension_semantics=("parallel", "arbitrary"),
            vmem_limit_bytes=vmem_limit,
        ),
        cost_estimate=cost,
    )(denoised, noisy)
    return tv_p[:, 0, 0], sse_p[:, 0, 0]


def total_variation_pallas(img, d_tile=None):
    """kornia-style total variation, shape (N,)."""
    tv, _ = tv_and_sse_pallas(img, img, d_tile=d_tile)
    return tv


def tv_denoise_forward_pallas(denoised, noisy, regularization_amount=0.001, d_tile=None):
    """TVDenoise.forward(): mean((denoised-noisy)^2) + reg * TV(denoised) -> (N,)."""
    tv, sse = tv_and_sse_pallas(denoised, noisy, d_tile=d_tile)
    mse = jnp.sum(sse) / float(denoised.size)
    return mse + regularization_amount * tv


# ----------------------------- pure-JAX references -----------------------------
def _total_variation_ref(img):
    d1 = jnp.abs(img[:, :, 1:, :] - img[:, :, :-1, :]).sum(axis=(1, 2, 3))
    d2 = jnp.abs(img[:, :, :, 1:] - img[:, :, :, :-1]).sum(axis=(1, 2, 3))
    d3 = jnp.abs(img[:, 1:, :, :] - img[:, :-1, :, :]).sum(axis=(1, 2, 3))
    return d1 + d2 + d3


def _tv_denoise_forward_ref(denoised, noisy, reg):
    return jnp.mean((denoised - noisy) ** 2) + reg * _total_variation_ref(denoised)


if __name__ == "__main__":
    key = jax.random.PRNGKey(0)
    k1, k2, k3 = jax.random.split(key, 3)
    reg = 0.001

    # --- Case 1: small unaligned volume (N, D, H, W) = (2, 4, 16, 16) ----------
    noisy = jax.random.normal(k1, (2, 4, 16, 16), dtype=jnp.float32)
    # Perturbed copy (as if a few optimizer steps had run) so the MSE term is nonzero.
    denoised = noisy + 0.05 * jax.random.normal(k2, noisy.shape, dtype=jnp.float32)

    ref_fwd = _tv_denoise_forward_ref(denoised, noisy, reg)
    ref_tv = _total_variation_ref(denoised)

    out = jax.block_until_ready(tv_denoise_forward_pallas(denoised, noisy, reg))
    assert out.shape == (2,), out.shape
    assert jnp.allclose(out, ref_fwd, rtol=1e-4, atol=1e-4), (out, ref_fwd)

    tv = jax.block_until_ready(total_variation_pallas(denoised))
    assert jnp.allclose(tv, ref_tv, rtol=1e-4, atol=1e-3), (tv, ref_tv)

    # --- Case 2: exercise the D-tiled accumulator + carried-boundary path ------
    out2 = jax.block_until_ready(tv_denoise_forward_pallas(denoised, noisy, reg, d_tile=2))
    assert jnp.allclose(out2, ref_fwd, rtol=1e-4, atol=1e-4), (out2, ref_fwd)
    out3 = jax.block_until_ready(tv_denoise_forward_pallas(denoised, noisy, reg, d_tile=1))
    assert jnp.allclose(out3, ref_fwd, rtol=1e-4, atol=1e-4), (out3, ref_fwd)

    # --- Case 3: lane/sublane-aligned volume (roll path) + ragged D tiling -----
    noisy2 = jax.random.normal(k3, (1, 6, 16, 128), dtype=jnp.float32)
    denoised2 = noisy2 + 0.05 * jax.random.normal(k1, noisy2.shape, dtype=jnp.float32)
    ref2_fwd = _tv_denoise_forward_ref(denoised2, noisy2, reg)
    # d_tile=4 with D=6 -> grid of 2 D-tiles, the last one ragged (2 valid slabs).
    out4 = jax.block_until_ready(tv_denoise_forward_pallas(denoised2, noisy2, reg, d_tile=4))
    assert out4.shape == (1,), out4.shape
    assert jnp.allclose(out4, ref2_fwd, rtol=1e-4, atol=1e-3), (out4, ref2_fwd)
    # Auto tile choice (divisor-preferring) on the same volume.
    out5 = jax.block_until_ready(tv_denoise_forward_pallas(denoised2, noisy2, reg))
    assert jnp.allclose(out5, ref2_fwd, rtol=1e-4, atol=1e-3), (out5, ref2_fwd)

    print("KERNEL_OK")
</pallas_src>

<mosaic_0001>
module attributes {stable_mosaic.version = 11 : i64} {
  func.func @_tv_sse_kernel(%arg0: i32, %arg1: i32, %arg2: memref<1x4x16x16xf32, #tpu.memory_space<vmem>>, %arg3: memref<1x4x16x16xf32, #tpu.memory_space<vmem>>, %arg4: memref<1x8x128xf32, #tpu.memory_space<vmem>>, %arg5: memref<1x8x128xf32, #tpu.memory_space<vmem>>, %arg6: memref<16x16xf32, #tpu.memory_space<vmem>>, %arg7: memref<16x16xf32, #tpu.memory_space<vmem>>, %arg8: memref<16x16xf32, #tpu.memory_space<vmem>>) attributes {dimension_semantics = [#tpu.dimension_semantics<parallel>, #tpu.dimension_semantics<arbitrary>], iteration_bounds = array<i64: 2, 1>, scalar_prefetch = 0 : i64, scratch_operands = 3 : i64, tpu.core_type = #tpu.core_type<tc>, window_params = [{transform_indices = @transform_0, window_bounds = array<i64: 1, 4, 16, 16>}, {transform_indices = @transform_1, window_bounds = array<i64: 1, 4, 16, 16>}, {transform_indices = @transform_2, window_bounds = array<i64: 1, 8, 128>}, {transform_indices = @transform_3, window_bounds = array<i64: 1, 8, 128>}]} {
    %c0_i32 = arith.constant 0 : i32
    %0 = arith.cmpi eq, %arg1, %c0_i32 : i32
    %1 = arith.extui %0 : i1 to i32
    %c0_i32_0 = arith.constant 0 : i32
    %2 = arith.cmpi ne, %1, %c0_i32_0 : i32
    scf.if %2 {
      %c0_35 = arith.constant 0 : index
      %c0_36 = arith.constant 0 : index
      %c0_37 = arith.constant 0 : index
      %c0_38 = arith.constant 0 : index
      %111 = vector.load %arg2[%c0_35, %c0_36, %c0_37, %c0_38] : memref<1x4x16x16xf32, #tpu.memory_space<vmem>>, vector<1x1x16x16xf32>
      %112 = vector.shape_cast %111 : vector<1x1x16x16xf32> to vector<16x16xf32>
      %c0_39 = arith.constant 0 : index
      %c0_40 = arith.constant 0 : index
      %113 = vector.load %arg8[%c0_39, %c0_40] : memref<16x16xf32, #tpu.memory_space<vmem>>, vector<16x16xf32>
      tpu.vector_store %arg8[%c0_39, %c0_40], %112 {strides = array<i32>} : memref<16x16xf32, #tpu.memory_space<vmem>>, vector<16x16xf32>,
    } else {
    }
    %cst = arith.constant 0.000000e+00 : f32
    %3 = vector.broadcast %cst : f32 to vector<16x16xf32>
    %c0 = arith.constant 0 : index
    %c0_1 = arith.constant 0 : index
    %4 = vector.load %arg8[%c0, %c0_1] : memref<16x16xf32, #tpu.memory_space<vmem>>, vector<16x16xf32>
    %c0_i32_2 = arith.constant 0 : i32
    %c0_3 = arith.constant 0 : index
    %5 = arith.index_cast %c0_i32_2 : i32 to index
    %c0_4 = arith.constant 0 : index
    %c0_5 = arith.constant 0 : index
    %6 = vector.load %arg2[%c0_3, %5, %c0_4, %c0_5] : memref<1x4x16x16xf32, #tpu.memory_space<vmem>>, vector<1x1x16x16xf32>
    %7 = vector.shape_cast %6 : vector<1x1x16x16xf32> to vector<16x16xf32>
    %c0_6 = arith.constant 0 : index
    %8 = arith.index_cast %c0_i32_2 : i32 to index
    %c0_7 = arith.constant 0 : index
    %c0_8 = arith.constant 0 : index
    %9 = vector.load %arg3[%c0_6, %8, %c0_7, %c0_8] : memref<1x4x16x16xf32, #tpu.memory_space<vmem>>, vector<1x1x16x16xf32>
    %10 = vector.shape_cast %9 : vector<1x1x16x16xf32> to vector<16x16xf32>
    %11 = vector.extract_strided_slice %7 {offsets = [0, 0], sizes = [16, 1], strides = [1, 1]} : vector<16x16xf32> to vector<16x1xf32>
    %12 = vector.extract_strided_slice %7 {offsets = [0, 0], sizes = [16, 15], strides = [1, 1]} : vector<16x16xf32> to vector<16x15xf32>
    %13 = tpu.concatenate %11, %12 in 1 : vector<16x1xf32>, vector<16x15xf32> -> vector<16x16xf32>
    %14 = arith.subf %7, %13 : vector<16x16xf32>
    %15 = math.absf %14 : vector<16x16xf32>
    %16 = vector.extract_strided_slice %7 {offsets = [0, 0], sizes = [1, 16], strides = [1, 1]} : vector<16x16xf32> to vector<1x16xf32>
    %17 = vector.extract_strided_slice %7 {offsets = [0, 0], sizes = [15, 16], strides = [1, 1]} : vector<16x16xf32> to vector<15x16xf32>
    %18 = tpu.concatenate %16, %17 in 0 : vector<1x16xf32>, vector<15x16xf32> -> vector<16x16xf32>
    %19 = arith.subf %7, %18 : vector<16x16xf32>
    %20 = math.absf %19 : vector<16x16xf32>
    %21 = arith.addf %15, %20 : vector<16x16xf32>
    %22 = arith.subf %7, %4 : vector<16x16xf32>
    %23 = math.absf %22 : vector<16x16xf32>
    %24 = arith.addf %21, %23 : vector<16x16xf32>
    %25 = arith.subf %7, %10 : vector<16x16xf32>
    %26 = arith.mulf %25, %25 : vector<16x16xf32>
    %27 = arith.addf %3, %24 : vector<16x16xf32>
    %28 = arith.addf %3, %26 : vector<16x16xf32>
    %c1_i32 = arith.constant 1 : i32
    %c0_9 = arith.constant 0 : index
    %29 = arith.index_cast %c1_i32 : i32 to index
    %c0_10 = arith.constant 0 : index
    %c0_11 = arith.constant 0 : index
    %30 = vector.load %arg2[%c0_9, %29, %c0_10, %c0_11] : memref<1x4x16x16xf32, #tpu.memory_space<vmem>>, vector<1x1x16x16xf32>
    %31 = vector.shape_cast %30 : vector<1x1x16x16xf32> to vector<16x16xf32>
    %c0_12 = arith.constant 0 : index
    %32 = arith.index_cast %c1_i32 : i32 to index
    %c0_13 = arith.constant 0 : index
    %c0_14 = arith.constant 0 : index
    %33 = vector.load %arg3[%c0_12, %32, %c0_13, %c0_14] : memref<1x4x16x16xf32, #tpu.memory_space<vmem>>, vector<1x1x16x16xf32>
    %34 = vector.shape_cast %33 : vector<1x1x16x16xf32> to vector<16x16xf32>
    %35 = vector.extract_strided_slice %31 {offsets = [0, 0], sizes = [16, 1], strides = [1, 1]} : vector<16x16xf32> to vector<16x1xf32>
    %36 = vector.extract_strided_slice %31 {offsets = [0, 0], sizes = [16, 15], strides = [1, 1]} : vector<16x16xf32> to vector<16x15xf32>
    %37 = tpu.concatenate %35, %36 in 1 : vector<16x1xf32>, vector<16x15xf32> -> vector<16x16xf32>
    %38 = arith.subf %31, %37 : vector<16x16xf32>
    %39 = math.absf %38 : vector<16x16xf32>
    %40 = vector.extract_strided_slice %31 {offsets = [0, 0], sizes = [1, 16], strides = [1, 1]} : vector<16x16xf32> to vector<1x16xf32>
    %41 = vector.extract_strided_slice %31 {offsets = [0, 0], sizes = [15, 16], strides = [1, 1]} : vector<16x16xf32> to vector<15x16xf32>
    %42 = tpu.concatenate %40, %41 in 0 : vector<1x16xf32>, vector<15x16xf32> -> vector<16x16xf32>
    %43 = arith.subf %31, %42 : vector<16x16xf32>
    %44 = math.absf %43 : vector<16x16xf32>
    %45 = arith.addf %39, %44 : vector<16x16xf32>
    %46 = arith.subf %31, %7 : vector<16x16xf32>
    %47 = math.absf %46 : vector<16x16xf32>
    %48 = arith.addf %45, %47 : vector<16x16xf32>
    %49 = arith.subf %31, %34 : vector<16x16xf32>
    %50 = arith.mulf %49, %49 : vector<16x16xf32>
    %51 = arith.addf %27, %48 : vector<16x16xf32>
    %52 = arith.addf %28, %50 : vector<16x16xf32>
    %c2_i32 = arith.constant 2 : i32
    %c0_15 = arith.constant 0 : index
    %53 = arith.index_cast %c2_i32 : i32 to index
    %c0_16 = arith.constant 0 : index
    %c0_17 = arith.constant 0 : index
    %54 = vector.load %arg2[%c0_15, %53, %c0_16, %c0_17] : memref<1x4x16x16xf32, #tpu.memory_space<vmem>>, vector<1x1x16x16xf32>
    %55 = vector.shape_cast %54 : vector<1x1x16x16xf32> to vector<16x16xf32>
    %c0_18 = arith.constant 0 : index
    %56 = arith.index_cast %c2_i32 : i32 to index
    %c0_19 = arith.constant 0 : index
    %c0_20 = arith.constant 0 : index
    %57 = vector.load %arg3[%c0_18, %56, %c0_19, %c0_20] : memref<1x4x16x16xf32, #tpu.memory_space<vmem>>, vector<1x1x16x16xf32>
    %58 = vector.shape_cast %57 : vector<1x1x16x16xf32> to vector<16x16xf32>
    %59 = vector.extract_strided_slice %55 {offsets = [0, 0], sizes = [16, 1], strides = [1, 1]} : vector<16x16xf32> to vector<16x1xf32>
    %60 = vector.extract_strided_slice %55 {offsets = [0, 0], sizes = [16, 15], strides = [1, 1]} : vector<16x16xf32> to vector<16x15xf32>
    %61 = tpu.concatenate %59, %60 in 1 : vector<16x1xf32>, vector<16x15xf32> -> vector<16x16xf32>
    %62 = arith.subf %55, %61 : vector<16x16xf32>
    %63 = math.absf %62 : vector<16x16xf32>
    %64 = vector.extract_strided_slice %55 {offsets = [0, 0], sizes = [1, 16], strides = [1, 1]} : vector<16x16xf32> to vector<1x16xf32>
    %65 = vector.extract_strided_slice %55 {offsets = [0, 0], sizes = [15, 16], strides = [1, 1]} : vector<16x16xf32> to vector<15x16xf32>
    %66 = tpu.concatenate %64, %65 in 0 : vector<1x16xf32>, vector<15x16xf32> -> vector<16x16xf32>
    %67 = arith.subf %55, %66 : vector<16x16xf32>
    %68 = math.absf %67 : vector<16x16xf32>
    %69 = arith.addf %63, %68 : vector<16x16xf32>
    %70 = arith.subf %55, %31 : vector<16x16xf32>
    %71 = math.absf %70 : vector<16x16xf32>
    %72 = arith.addf %69, %71 : vector<16x16xf32>
    %73 = arith.subf %55, %58 : vector<16x16xf32>
    %74 = arith.mulf %73, %73 : vector<16x16xf32>
    %75 = arith.addf %51, %72 : vector<16x16xf32>
    %76 = arith.addf %52, %74 : vector<16x16xf32>
    %c3_i32 = arith.constant 3 : i32
    %c0_21 = arith.constant 0 : index
    %77 = arith.index_cast %c3_i32 : i32 to index
    %c0_22 = arith.constant 0 : index
    %c0_23 = arith.constant 0 : index
    %78 = vector.load %arg2[%c0_21, %77, %c0_22, %c0_23] : memref<1x4x16x16xf32, #tpu.memory_space<vmem>>, vector<1x1x16x16xf32>
    %79 = vector.shape_cast %78 : vector<1x1x16x16xf32> to vector<16x16xf32>
    %c0_24 = arith.constant 0 : index
    %80 = arith.index_cast %c3_i32 : i32 to index
    %c0_25 = arith.constant 0 : index
    %c0_26 = arith.constant 0 : index
    %81 = vector.load %arg3[%c0_24, %80, %c0_25, %c0_26] : memref<1x4x16x16xf32, #tpu.memory_space<vmem>>, vector<1x1x16x16xf32>
    %82 = vector.shape_cast %81 : vector<1x1x16x16xf32> to vector<16x16xf32>
    %83 = vector.extract_strided_slice %79 {offsets = [0, 0], sizes = [16, 1], strides = [1, 1]} : vector<16x16xf32> to vector<16x1xf32>
    %84 = vector.extract_strided_slice %79 {offsets = [0, 0], sizes = [16, 15], strides = [1, 1]} : vector<16x16xf32> to vector<16x15xf32>
    %85 = tpu.concatenate %83, %84 in 1 : vector<16x1xf32>, vector<16x15xf32> -> vector<16x16xf32>
    %86 = arith.subf %79, %85 : vector<16x16xf32>
    %87 = math.absf %86 : vector<16x16xf32>
    %88 = vector.extract_strided_slice %79 {offsets = [0, 0], sizes = [1, 16], strides = [1, 1]} : vector<16x16xf32> to vector<1x16xf32>
    %89 = vector.extract_strided_slice %79 {offsets = [0, 0], sizes = [15, 16], strides = [1, 1]} : vector<16x16xf32> to vector<15x16xf32>
    %90 = tpu.concatenate %88, %89 in 0 : vector<1x16xf32>, vector<15x16xf32> -> vector<16x16xf32>
    %91 = arith.subf %79, %90 : vector<16x16xf32>
    %92 = math.absf %91 : vector<16x16xf32>
    %93 = arith.addf %87, %92 : vector<16x16xf32>
    %94 = arith.subf %79, %55 : vector<16x16xf32>
    %95 = math.absf %94 : vector<16x16xf32>
    %96 = arith.addf %93, %95 : vector<16x16xf32>
    %97 = arith.subf %79, %82 : vector<16x16xf32>
    %98 = arith.mulf %97, %97 : vector<16x16xf32>
    %99 = arith.addf %75, %96 : vector<16x16xf32>
    %100 = arith.addf %76, %98 : vector<16x16xf32>
    %c4_i32 = arith.constant 4 : i32
    %c0_27 = arith.constant 0 : index
    %c0_28 = arith.constant 0 : index
    %101 = vector.load %arg8[%c0_27, %c0_28] : memref<16x16xf32, #tpu.memory_space<vmem>>, vector<16x16xf32>
    tpu.vector_store %arg8[%c0_27, %c0_28], %79 {strides = array<i32>} : memref<16x16xf32, #tpu.memory_space<vmem>>, vector<16x16xf32>,
    %c0_i32_29 = arith.constant 0 : i32
    %102 = arith.cmpi eq, %arg1, %c0_i32_29 : i32
    %103 = arith.extui %102 : i1 to i32
    %c0_i32_30 = arith.constant 0 : i32
    %104 = arith.cmpi ne, %103, %c0_i32_30 : i32
    scf.if %104 {
      %c0_35 = arith.constant 0 : index
      %c0_36 = arith.constant 0 : index
      %111 = vector.load %arg6[%c0_35, %c0_36] : memref<16x16xf32, #tpu.memory_space<vmem>>, vector<16x16xf32>
      tpu.vector_store %arg6[%c0_35, %c0_36], %99 {strides = array<i32>} : memref<16x16xf32, #tpu.memory_space<vmem>>, vector<16x16xf32>,
      %c0_37 = arith.constant 0 : index
      %c0_38 = arith.constant 0 : index
      %112 = vector.load %arg7[%c0_37, %c0_38] : memref<16x16xf32, #tpu.memory_space<vmem>>, vector<16x16xf32>
      tpu.vector_store %arg7[%c0_37, %c0_38], %100 {strides = array<i32>} : memref<16x16xf32, #tpu.memory_space<vmem>>, vector<16x16xf32>,
    } else {
    }
    %c0_i32_31 = arith.constant 0 : i32
    %105 = arith.cmpi sgt, %arg1, %c0_i32_31 : i32
    %106 = arith.extui %105 : i1 to i32
    %c0_i32_32 = arith.constant 0 : i32
    %107 = arith.cmpi ne, %106, %c0_i32_32 : i32
    scf.if %107 {
      %c0_35 = arith.constant 0 : index
      %c0_36 = arith.constant 0 : index
      %111 = vector.load %arg6[%c0_35, %c0_36] : memref<16x16xf32, #tpu.memory_space<vmem>>, vector<16x16xf32>
      %112 = arith.addf %111, %99 : vector<16x16xf32>
      %c0_37 = arith.constant 0 : index
      %c0_38 = arith.constant 0 : index
      %113 = vector.load %arg6[%c0_37, %c0_38] : memref<16x16xf32, #tpu.memory_space<vmem>>, vector<16x16xf32>
      tpu.vector_store %arg6[%c0_37, %c0_38], %112 {strides = array<i32>} : memref<16x16xf32, #tpu.memory_space<vmem>>, vector<16x16xf32>,
      %c0_39 = arith.constant 0 : index
      %c0_40 = arith.constant 0 : index
      %114 = vector.load %arg7[%c0_39, %c0_40] : memref<16x16xf32, #tpu.memory_space<vmem>>, vector<16x16xf32>
      %115 = arith.addf %114, %100 : vector<16x16xf32>
      %c0_41 = arith.constant 0 : index
      %c0_42 = arith.constant 0 : index
      %116 = vector.load %arg7[%c0_41, %c0_42] : memref<16x16xf32, #tpu.memory_space<vmem>>, vector<16x16xf32>
      tpu.vector_store %arg7[%c0_41, %c0_42], %115 {strides = array<i32>} : memref<16x16xf32, #tpu.memory_space<vmem>>, vector<16x16xf32>,
    } else {
    }
    %c0_i32_33 = arith.constant 0 : i32
    %108 = arith.cmpi eq, %arg1, %c0_i32_33 : i32
    %109 = arith.extui %108 : i1 to i32
    %c0_i32_34 = arith.constant 0 : i32
    %110 = arith.cmpi ne, %109, %c0_i32_34 : i32
    scf.if %110 {
      %c0_35 = arith.constant 0 : index
      %c0_36 = arith.constant 0 : index
      %111 = vector.load %arg6[%c0_35, %c0_36] : memref<16x16xf32, #tpu.memory_space<vmem>>, vector<16x16xf32>
      %112 = vector.shape_cast %111 : vector<16x16xf32> to vector<1x16x16xf32>
      %cst_37 = arith.constant dense<0.000000e+00> : vector<1xf32>
      %113 = vector.multi_reduction <add>, %112, %cst_37 [1, 2] : vector<1x16x16xf32> to vector<1xf32>
      %114 = vector.shape_cast %113 : vector<1xf32> to vector<1x1x1xf32>
      %115 = vector.extract %114[0, 0, 0] : f32 from vector<1x1x1xf32>
      %116 = vector.broadcast %115 : f32 to vector<1x8x128xf32>
      %c0_38 = arith.constant 0 : index
      %c0_39 = arith.constant 0 : index
      %c0_40 = arith.constant 0 : index
      %117 = vector.load %arg4[%c0_38, %c0_39, %c0_40] : memref<1x8x128xf32, #tpu.memory_space<vmem>>, vector<1x8x128xf32>
      tpu.vector_store %arg4[%c0_38, %c0_39, %c0_40], %116 {strides = array<i32>} : memref<1x8x128xf32, #tpu.memory_space<vmem>>, vector<1x8x128xf32>,
      %c0_41 = arith.constant 0 : index
      %c0_42 = arith.constant 0 : index
      %118 = vector.load %arg7[%c0_41, %c0_42] : memref<16x16xf32, #tpu.memory_space<vmem>>, vector<16x16xf32>
      %119 = vector.shape_cast %118 : vector<16x16xf32> to vector<1x16x16xf32>
      %cst_43 = arith.constant dense<0.000000e+00> : vector<1xf32>
      %120 = vector.multi_reduction <add>, %119, %cst_43 [1, 2] : vector<1x16x16xf32> to vector<1xf32>
      %121 = vector.shape_cast %120 : vector<1xf32> to vector<1x1x1xf32>
      %122 = vector.extract %121[0, 0, 0] : f32 from vector<1x1x1xf32>
      %123 = vector.broadcast %122 : f32 to vector<1x8x128xf32>
      %c0_44 = arith.constant 0 : index
      %c0_45 = arith.constant 0 : index
      %c0_46 = arith.constant 0 : index
      %124 = vector.load %arg5[%c0_44, %c0_45, %c0_46] : memref<1x8x128xf32, #tpu.memory_space<vmem>>, vector<1x8x128xf32>
      tpu.vector_store %arg5[%c0_44, %c0_45, %c0_46], %123 {strides = array<i32>} : memref<1x8x128xf32, #tpu.memory_space<vmem>>, vector<1x8x128xf32>,
    } else {
    }
    return
  }
  func.func @transform_0(%arg0: i32, %arg1: i32) -> (i32, i32, i32, i32) {
    %c0_i32 = arith.constant 0 : i32
    %c0_i32_0 = arith.constant 0 : i32
    %c0_i32_1 = arith.constant 0 : i32
    return %arg0, %arg1, %c0_i32, %c0_i32_0 : i32, i32, i32, i32
  }
  func.func @transform_1(%arg0: i32, %arg1: i32) -> (i32, i32, i32, i32) {
    %c0_i32 = arith.constant 0 : i32
    %c0_i32_0 = arith.constant 0 : i32
    %c0_i32_1 = arith.constant 0 : i32
    return %arg0, %arg1, %c0_i32, %c0_i32_0 : i32, i32, i32, i32
  }
  func.func @transform_2(%arg0: i32, %arg1: i32) -> (i32, i32, i32) {
    %c0_i32 = arith.constant 0 : i32
    %c0_i32_0 = arith.constant 0 : i32
    %c0_i32_1 = arith.constant 0 : i32
    return %arg0, %c0_i32, %c0_i32_0 : i32, i32, i32
  }
  func.func @transform_3(%arg0: i32, %arg1: i32) -> (i32, i32, i32) {
    %c0_i32 = arith.constant 0 : i32
    %c0_i32_0 = arith.constant 0 : i32
    %c0_i32_1 = arith.constant 0 : i32
    return %arg0, %c0_i32, %c0_i32_0 : i32, i32, i32
  }
}

</mosaic_0001>

<bundles_post_ra>
// kernel: tpu_custom_call.1
= control target key start
LH: loop header
LB: loop body
LE: loop exit
PB: predicated region body
PF: predicated region fallthrough
CT: control target
= control target key end

     0   :  { %9 = vsyncpa [#allocation6], 0  ;;  %s1421_s0 = inlined_call_operand.hbm [shape: f32[2,4,16,16], index: 0, kind: input, shape index: {}]   ;;  %s1422_s1 = inlined_call_operand.hbm [shape: f32[2,4,16,16], index: 1, kind: input, shape index: {}]   ;;  %s1423_s2 = inlined_call_operand.hbm [shape: f32[2,8,128], index: 2, kind: output, shape index: {0}]   ;;  %s1424_s3 = inlined_call_operand.hbm [shape: f32[2,8,128], index: 3, kind: output, shape index: {1}]  }
   0x1   :  { %11 = vsyncpa [#allocation6 + $0x1], 0 }
   0x2   :  { %12 = vsyncpa [#allocation9], 0 }
   0x3   :  { %14 = vsyncpa [#allocation9 + $0x1], 0 }
   0x4   :  { %15 = vsyncpa [#allocation7], 0 }
   0x5   :  { %17 = vsyncpa [#allocation7 + $0x1], 0 }
   0x6   :  { %18 = vsyncpa [#allocation12], 0 }
   0x7   :  { %20 = vsyncpa [#allocation12 + $0x1], 0  ;;  %s1012_s12 = smov 0   ;;  %s1014_s13 = smov 0  }
   0x8   :  { %s1016_s14 = smov 0   ;;  %s1018_s15 = smov 0  }
   0x9   :  { %s1020_s16 = smov 0   ;;  %s1022_s17 = smov 0  }
   0xa LB: > { %s691_s18 = sadd.s32 4294967295, %s983_s17   ;;  %s692_s19 = sadd.s32 4294967294, %s983_s17   ;;  %s983_s17 = sphi %s1022_s17, %s26_s17   ;;  %s979_s16 = sphi %s1020_s16, %s1442_s16   ;;  %s975_s15 = sphi %s1018_s15, %s1441_s15   ;;  %s971_s14 = sphi %s1016_s14, %s1440_s14   ;;  %s967_s13 = sphi %s1014_s13, %s1439_s13   ;;  %s963_s12 = sphi %s1012_s12, %s1438_s12  }
   0xb   : > { %s38_s20 = sadd.s32 1, %s979_s16  ;;  %s47_s21 = sadd.s32 1, %s971_s14 }
   0xc   : > { %p40_p0 = scmp.ge.s32.totalorder %s38_s20, 2  ;;  %p54_p1 = scmp.ne.s32.totalorder %s971_s14, %s967_s13 }
   0xd   : > { %p55_p2 = scmp.eq.s32.totalorder %s983_s17, 0  ;;  %p60_p3 = scmp.ne.s32.totalorder %s967_s13, %s963_s12 }
   0xe   : > { %s1444_s20 = smov (%p40_p0, %s38_s20), 0  ;;  %p61_p5 = scmp.eq.s32.totalorder %s691_s18, 0 }
   0xf   : > { %p1053_p4 = por %p55_p2, %p54_p1  ;;  %s42_s23 = ssub.s32 %s979_s16, %s1444_s20 }
  0x10   : > { %p112_p6 = scmp.eq.s32.totalorder %s691_s18, 1  ;;  %p45_p7 = scmp.eq.s32.totalorder %s42_s23, 0 }
  0x11   : > { %p1059_p8 = por %p61_p5, %p60_p3  ;;  %p118_p10 = scmp.eq.s32.totalorder %s692_s19, 1 }
  0x12   : > { %p1063_p9 = por %p112_p6, %p54_p1  ;;  %p752_p13 = scmp.lt.s32.totalorder %s983_s17, 2 }
  0x13   : > { %s1428_s24 = scalar_select %p1059_p8, 1, 0 }
  0x14   : > { %s1429_s25 = scalar_select %p1063_p9, 1, 0 }
  0x15   : > { %s1068_s26 = scalar_select %p45_p7, %s971_s14, %s47_s21  }
  0x16   : > { %p1070_p11 = por %p118_p10, %p60_p3  ;;  %s1077_s28 = sand.u32 1, %s971_s14  }
  0x17   : > { %s695_s29 = sshll.u32 %s1077_s28, 6  ;;  %s724_s30 = sshll.u32 %s979_s16, 10 }
  0x18   : > { %s1430_s27 = scalar_select %p1070_p11, 1, 0 }
  0x19   : > { %s1086_s6 = scalar_lea.hbm %s1421_s0, %s724_s30  ;;  %s168_s7 = scalar_lea.vmem [#allocation5], %s695_s29 }
  0x1a   : > { %s178_s8 = sshll.u32 %s168_s7, 4  ;;  %p1094_p0 = pnand %p752_p13, %p1053_p4  ;;  %s1090_s8 = int_to_ptr.vmem [resolvable:$true] %s178_s8 }
  0x1b   : > { %s165_s10 = scalar_lea.sflag [#allocation6], %s1077_s28  ;;  %s805_s11 = scalar_lea.hbm %s1086_s6, 1024 }
  0x1c   : > { %p806_p2 = scmp.ne.s32.totalorder %s1086_s6, %s805_s11  ;;  %p807_p3 = pneg %p1094_p0 }
  0x1d   : > { %s810_s21 = scalar_lea.hbm %s1421_s0, 2048  ;;  %p811_p4 = scmp.lt.u32.totalorder %s1086_s6, %s1421_s0 }
  0x1e   : > { %p808_p5 = pnand %p807_p3, %p806_p2  ;;  %p812_p7 = scmp.lt.u32.totalorder %s810_s21, %s805_s11 }
  0x1f   : > { %p814_p13 = scmp.lt.u32.totalorder %s805_s11, %s1086_s6 }
  0x20   : > { %p809_p6 = pneg %p808_p5  ;;  %p813_p10 = por %p812_p7, %p811_p4 }
  0x22   : > { %p815_p12 = por %p814_p13, %p813_p10 }
  0x24   : > { %p816_p1 = pnand %p815_p12, %p809_p6 }
  0x26   : > { %819 = shalt.err (!%p816_p1)
}
  0x27   : > { %s820_s4 = scalar_lea.vmem %s1090_s8, 1024  ;;  %s985_s5 = smov [#allocation5]  }
  0x28   : > { %p821_p2 = scmp.ne.s32.totalorder %s1090_s8, %s820_s4  ;;  %s825_s7 = sshll.u32 %s985_s5, 4  ;;  %s826_s7 = int_to_ptr.vmem [resolvable:$false] %s825_s7 }
  0x29   : > { %s827_s18 = scalar_lea.vmem %s826_s7, 2048  ;;  %p828_p9 = scmp.lt.s32.totalorder %s1090_s8, %s826_s7 }
  0x2a   : > { %p823_p5 = pnand %p821_p2, %p807_p3  ;;  %p829_p4 = scmp.lt.s32.totalorder %s827_s18, %s820_s4 }
  0x2c   : > { %p824_p11 = pneg %p823_p5  ;;  %p830_p7 = por %p829_p4, %p828_p9 }
  0x2e   : > { %p831_p10 = pnand %p830_p7, %p824_p11 }
  0x30   : > { %834 = shalt.err (!%p831_p10)
}
  0x31   : > { %s986_s11 = smov 128   ;;  %s987_s19 = smov 8  }
  0x32   : > { %741 = dma.hbm_to_vmem [thread:$0]  (!%p1094_p0), %s1086_s6, 1024, %s1090_s8, %s165_s10, %s986_s11, %s986_s11, %s987_s19  }
  0x33   : > { %p210_p9 = scmp.lt.s32.totalorder %s983_s17, 3  ;;  %s1136_s23 = scalar_lea.hbm %s1422_s1, %s724_s30 }
  0x34   : > { %p1432_p11 = scmp.ge.s32.totalorder %s983_s17, 1  ;;  %s192_s5 = scalar_lea.vmem [#allocation8], %s695_s29 }
  0x35   : > { %s202_s7 = sshll.u32 %s192_s5, 4  ;;  %s189_s6 = scalar_lea.sflag [#allocation9], %s1077_s28  ;;  %s1146_s7 = int_to_ptr.vmem [resolvable:$true] %s202_s7 }
  0x36   : > { %p1140_p12 = pnand %p1432_p11, %p210_p9  ;;  %s835_s8 = scalar_lea.hbm %s1136_s23, 1024 }
  0x37   : > { %p836_p1 = scmp.ne.s32.totalorder %s1136_s23, %s835_s8  ;;  %s840_s18 = scalar_lea.hbm %s1422_s1, 2048 }
  0x38   : > { %p841_p2 = scmp.lt.u32.totalorder %s1136_s23, %s1422_s1  ;;  %p842_p5 = scmp.lt.u32.totalorder %s840_s18, %s835_s8 }
  0x39   : > { %p838_p6 = pnand %p836_p1, %p807_p3  ;;  %p844_p7 = scmp.lt.u32.totalorder %s835_s8, %s1136_s23 }
  0x3a   : > { %p843_p4 = por %p842_p5, %p841_p2 }
  0x3b   : > { %p839_p13 = pneg %p838_p6 }
  0x3c   : > { %p845_p10 = por %p844_p7, %p843_p4 }
  0x3e   : > { %p846_p9 = pnand %p845_p10, %p839_p13 }
  0x40   : > { %849 = shalt.err (!%p846_p9)
}
  0x41   : > { %s850_s29 = scalar_lea.vmem %s1146_s7, 1024  ;;  %s988_s5 = smov [#allocation8]  }
  0x42   : > { %p851_p11 = scmp.ne.s32.totalorder %s1146_s7, %s850_s29  ;;  %s855_s30 = sshll.u32 %s988_s5, 4  ;;  %s856_s30 = int_to_ptr.vmem [resolvable:$false] %s855_s30 }
  0x43   : > { %s857_s10 = scalar_lea.vmem %s856_s30, 2048  ;;  %p858_p8 = scmp.lt.s32.totalorder %s1146_s7, %s856_s30 }
  0x44   : > { %p853_p1 = pnand %p851_p11, %p807_p3  ;;  %p859_p2 = scmp.lt.s32.totalorder %s857_s10, %s850_s29 }
  0x46   : > { %p854_p6 = pneg %p853_p1  ;;  %p860_p5 = por %p859_p2, %p858_p8 }
  0x48   : > { %p861_p4 = pnand %p860_p5, %p854_p6 }
  0x4a   : > { %864 = shalt.err (!%p861_p4)
}
  0x4b   : > { %744 = dma.hbm_to_vmem [thread:$0]  (!%p1094_p0), %s1136_s23, 1024, %s1146_s7, %s189_s6, %s986_s11, %s986_s11, %s987_s19  }
  0x4c   : > { %214 = sbr.rel (%p1140_p12) target bundleno = 479 (0x1df), region = 28  ;;  %s1180_s8 = sand.u32 (!%p1140_p12), 1, %s967_s13  }
  0x4d   : > { %s702_s18 = sshll.u32 (!%p1140_p12), %s1180_s8, 6  ;;  %s217_s21 = scalar_lea.sflag (!%p1140_p12), [#allocation6], %s1180_s8 }
  0x4e   : > { %s1184_s9 = scalar_lea.vmem (!%p1140_p12), [#allocation5], %s702_s18  ;;  %p1434_p8 = scmp.ne.s32.totalorder (!%p1140_p12), %s1428_s24, 0 }
  0x53   : > { %946 = dma.done.wait (%p1434_p8), %s217_s21, 1024  }
  0x54   : > { %948 = vsyncadd (%p1434_p8), %s217_s21, 4294966272  ;;  %s226_s28 = scalar_lea.sflag [#allocation9], %s1180_s8  ;;  %s1191_s11 = scalar_lea.vmem [#allocation8], %s702_s18 }
  0x55   : > { %950 = dma.done.wait (%p1434_p8), %s226_s28, 1024  }
  0x56   : > { %952 = vsyncadd (%p1434_p8), %s226_s28, 4294966272  ;;  %vm270_vm0 = vcmask 130048   ;;  %v1198_v0 = vld [vmem:[%s1184_s9 + $0x10] sm:$0xff]  ;;  %v1202_v2 = vld [vmem:[%s1184_s9] sm:$0xff]  ;;  %s989_s19 = smov 1   ;;  %vm294_vm1 = vcmask 1040384  }
  0x57   : > { %v708_v1 = vld [vmem:[%s1191_s11 + $0x10] sm:$0xff]  ;;  %329 = vrot.lane.b32.xlu1 %v1198_v0, %s989_s19  ;;  %v277_v3 = vld [vmem:[%s1191_s11] sm:$0xff]  ;;  %281 = vrot.lane.b32.xlu0 %v1202_v2, %s989_s19  ;;  %271 = vst.msk [vmem:[#allocation4] sm:$0xff] %vm270_vm0, %v1202_v2  ;;  %v341_v45 = vrot.slane %v1198_v0, 7  ;;  %v295_v46 = vrot.slane %v1202_v2, 7  ;;  %v353_v51 = vsub.f32 %v1198_v0, %v1202_v2  ;;  %vm287_vm2 = vcmask 7168  }
  0x58   : > { %v1210_v4 = vld [vmem:[%s1184_s9 + $0x18] sm:$0xff]  ;;  %v1216_v6 = vld [vmem:[%s1184_s9 + $0x8] sm:$0xff]  ;;  %v359_v12 = vsub.f32 %v1198_v0, %v708_v1  ;;  %v313_v13 = vsub.f32 %v1202_v2, %v277_v3  ;;  %v712_v18 = vld [vmem:[%s1191_s11 + $0x20] sm:$0xff]  ;;  %s704_s24 = sshll.u32 %s1180_s8, 3  ;;  %s720_s7 = sshll.u32 %s975_s15, 7 }
  0x59   : > { %v709_v5 = vld [vmem:[%s1191_s11 + $0x18] sm:$0xff]  ;;  %v278_v7 = vld [vmem:[%s1191_s11 + $0x8] sm:$0xff]  ;;  %272 = vst.msk [vmem:[#allocation4 + $0x8] sm:$0xff] %vm270_vm0, %v1216_v6  ;;  %v1240_v21 = vld [vmem:[%s1184_s9 + $0x20] sm:$0xff]  ;;  %v342_v47 = vrot.slane %v1210_v4, 7  ;;  %v346_v48 = vsel %vm294_vm1, %v1198_v0, %v341_v45  ;;  %v300_v49 = vsel %vm294_vm1, %v1202_v2, %v295_v46  ;;  %v296_v50 = vrot.slane %v1216_v6, 7  ;;  %s1345_s30 = scalar_lea.hbm %s1423_s2, %s720_s7 }
  0x5a   : > { %v360_v8 = vsub.f32 %v1210_v4, %v709_v5  ;;  %v314_v9 = vsub.f32 %v1216_v6, %v278_v7  ;;  %v1222_v10 = vld [vmem:[%s1184_s9 + $0x28] sm:$0xff]  ;;  %v717_v15 = vld [vmem:[%s1191_s11 + $0x38] sm:$0xff]  ;;  %v716_v24 = vld [vmem:[%s1191_s11 + $0x30] sm:$0xff]  ;;  %v361_v25 = vmul.f32 %v359_v12, %v359_v12  ;;  %v315_v26 = vmul.f32 %v313_v13, %v313_v13  ;;  %s261_s23 = scalar_lea.vmem [#allocation11], %s704_s24  ;;  %s254_s6 = scalar_lea.vmem [#allocation10], %s704_s24 }
  0x5b   : > { %v713_v11 = vld [vmem:[%s1191_s11 + $0x28] sm:$0xff]  ;;  %331 = vrot.lane.b32.xlu1 %v1210_v4, %s989_s19  ;;  %283 = vrot.lane.b32.xlu0 %v1216_v6, %s989_s19  ;;  %v1237_v19 = vld [vmem:[%s1184_s9 + $0x38] sm:$0xff]  ;;  %v405_v27 = vsub.f32 %v1240_v21, %v712_v18  ;;  %v347_v52 = vsub.f32 %v1198_v0, %v346_v48  ;;  %v301_v53 = vsub.f32 %v1202_v2, %v300_v49  ;;  %v387_v57 = vrot.slane %v1240_v21, 7  ;;  %s552_s4 = sshll.u32 %s261_s23, 4  ;;  %s539_s22 = sshll.u32 %s254_s6, 4  ;;  %s1340_s4 = int_to_ptr.vmem [resolvable:$true] %s552_s4  ;;  %s1347_s22 = int_to_ptr.vmem [resolvable:$true] %s539_s22 }
  0x5c   : > { %v406_v14 = vsub.f32 %v1222_v10, %v713_v11  ;;  %v362_v16 = vmul.f32 %v360_v8, %v360_v8  ;;  %v316_v17 = vmul.f32 %v314_v9, %v314_v9  ;;  %v452_v22 = vsub.f32 %v1237_v19, %v717_v15  ;;  %v1246_v29 = vld [vmem:[%s1184_s9 + $0x30] sm:$0xff]  ;;  %s1352_s9 = scalar_lea.hbm %s1424_s3, %s720_s7  ;;  %s521_s28 = scalar_lea.sflag [#allocation7], %s1180_s8 }
  0x5d   : > { %v451_v32 = vsub.f32 %v1246_v29, %v716_v24  ;;  %v365_v35 = vadd.f32 %v361_v25, %v315_v26  ;;  %v407_v36 = vmul.f32 %v405_v27, %v405_v27  ;;  %v343_v54 = vsel %vm294_vm1, %v341_v45, %v342_v47  ;;  %s865_s11 = scalar_lea.vmem %s1347_s22, 128  ;;  %p1435_p3 = scmp.ne.s32.totalorder %s1429_s25, 0 }
  0x5e   : > { %v408_v20 = vmul.f32 %v406_v14, %v406_v14  ;;  %v366_v23 = vadd.f32 %v362_v16, %v316_v17  ;;  %v454_v28 = vmul.f32 %v452_v22, %v452_v22  ;;  %v273_v30 = vld [vmem:[#allocation4] sm:$0xff]  ;;  %v297_v56 = vsel %vm294_vm1, %v295_v46, %v296_v50  ;;  %p866_p0 = scmp.ne.s32.totalorder %s1347_s22, %s865_s11 }
  0x5f   : > { %377 = vrot.lane.b32.xlu1 %v1222_v10, %s989_s19  ;;  %375 = vrot.lane.b32.xlu0 %v1240_v21, %s989_s19  ;;  %460 = vst.msk [vmem:[#allocation4] sm:$0xff] %vm270_vm0, %v1246_v29  ;;  %v453_v37 = vmul.f32 %v451_v32, %v451_v32  ;;  %v411_v38 = vadd.f32 %v407_v36, %v365_v35  ;;  %v388_v58 = vrot.slane %v1222_v10, 7  ;;  %v355_v59 = vand.u32 2147483647, %v353_v51 }
  0x60   : > { %v412_v31 = vadd.f32 %v408_v20, %v366_v23  ;;  %v1255_v33 = vld [vmem:[#allocation4 + $0x8] sm:$0xff]  ;;  %v307_v55 = vsub.f32 %v1202_v2, %v273_v30  ;;  %v348_v60 = vsub.f32 %v1210_v4, %v343_v54  ;;  %v354_v61 = vsub.f32 %v1210_v4, %v1216_v6  ;;  %p867_p12 = pnand %p866_p0, %p1435_p3 }
  0x61   : > { %461 = vst.msk [vmem:[#allocation4 + $0x8] sm:$0xff] %vm270_vm0, %v1237_v19  ;;  %v457_v39 = vadd.f32 %v453_v37, %v411_v38  ;;  %v349_v63 = vand.u32 2147483647, %v347_v52  ;;  %v303_v3 = vand.u32 2147483647, %v301_v53  ;;  %v433_v5 = vrot.slane %v1246_v29, 7 }
  0x62   : > { %v458_v34 = vadd.f32 %v454_v28, %v412_v31  ;;  %v434_v7 = vrot.slane %v1237_v19, 7  ;;  %v309_v11 = vand.u32 2147483647, %v307_v55  ;;  %v302_v12 = vsub.f32 %v1216_v6, %v297_v56  ;;  %p868_p13 = pneg %p867_p12 }
  0x63   : > { %423 = vrot.lane.b32.xlu1 %v1237_v19, %s989_s19  ;;  %421 = vrot.lane.b32.xlu0 %v1246_v29, %s989_s19  ;;  %467 = vst.msk [vmem:[#allocation3] sm:$0xff] %vm270_vm0, %v457_v39  ;;  %v308_v15 = vsub.f32 %v1216_v6, %v1255_v33  ;;  %v389_v16 = vsel %vm294_vm1, %v387_v57, %v388_v58  ;;  %v350_v17 = vand.u32 2147483647, %v348_v60  ;;  %v356_v18 = vand.u32 2147483647, %v354_v61  ;;  %s990_s19 = smov [#allocation10]  }
  0x64   : > { %468 = vst.msk [vmem:[#allocation3 + $0x8] sm:$0xff] %vm270_vm0, %v458_v34  ;;  %v400_v20 = vsub.f32 %v1222_v10, %v1210_v4  ;;  %v392_v22 = vsel %vm294_vm1, %v1240_v21, %v387_v57  ;;  %v435_v27 = vsel %vm294_vm1, %v433_v5, %v434_v7  ;;  %v394_v31 = vsub.f32 %v1222_v10, %v389_v16  ;;  %s869_s24 = sshll.u32 %s990_s19, 4  ;;  %s870_s24 = int_to_ptr.vmem [resolvable:$false] %s869_s24 }
  0x65   : > { %v399_v32 = vsub.f32 %v1240_v21, %v1198_v0  ;;  %v304_v35 = vand.u32 2147483647, %v302_v12  ;;  %v310_v36 = vand.u32 2147483647, %v308_v15  ;;  %v393_v38 = vsub.f32 %v1240_v21, %v392_v22  ;;  %s871_s29 = scalar_lea.vmem %s870_s24, 256  ;;  %p872_p7 = scmp.lt.s32.totalorder %s1347_s22, %s870_s24 }
  0x66   : > { %v402_v37 = vand.u32 2147483647, %v400_v20  ;;  %v440_v39 = vsub.f32 %v1237_v19, %v435_v27  ;;  %v446_v51 = vsub.f32 %v1237_v19, %v1222_v10  ;;  %v445_v55 = vsub.f32 %v1246_v29, %v1240_v21  ;;  %p873_p10 = scmp.lt.s32.totalorder %s871_s29, %s865_s11 }
  0x67   : > { %v395_v52 = vand.u32 2147483647, %v393_v38 }
  0x68   : > { %v442_v60 = vand.u32 2147483647, %v440_v39  ;;  %p874_p9 = por %p873_p10, %p872_p7 }
  0x6a   : > { %v504_v40 = vld [vmem:[#allocation3] sm:$0xff]  ;;  %p875_p11 = pnand %p874_p9, %p868_p13 }
  0x6b   : > { %v505_v41 = vld [vmem:[#allocation3 + $0x8] sm:$0xff]  ;;  %v506_v42 = vsel %vm270_vm0, %v504_v40, 0.0 }
  0x6c   : > { %v507_v43 = vsel %vm270_vm0, %v505_v41, 0.0 }
  0x6d   : > { %v508_v44 = vadd.f32 %v507_v43, %v506_v42 }
  0x87   : > { %509 = vadd.xlane.f32.xlu1 %v508_v44 }
  0xc9   : > { %v330_v62 = vpop.permute.xlu1 %329  ;;  %v282_v1 = vpop.permute.xlu0 %281 }
  0xca   : > { %v335_v8 = vsel %vm287_vm2, %v1198_v0, %v330_v62  ;;  %v288_v9 = vsel %vm287_vm2, %v1202_v2, %v282_v1 }
  0xcb   : > { %v337_v13 = vsub.f32 %v1198_v0, %v335_v8  ;;  %v290_v14 = vsub.f32 %v1202_v2, %v288_v9  ;;  %v438_v2 = vsel %vm294_vm1, %v1246_v29, %v433_v5  ;;  %v396_v0 = vand.u32 2147483647, %v394_v31 }
  0xcc   : > { %v439_v40 = vsub.f32 %v1246_v29, %v438_v2  ;;  %v448_v9 = vand.u32 2147483647, %v446_v51 }
  0xcd   : > { %v339_v23 = vand.u32 2147483647, %v337_v13  ;;  %v292_v24 = vand.u32 2147483647, %v290_v14  ;;  %v332_v25 = vpop.permute.xlu1 %331  ;;  %v284_v26 = vpop.permute.xlu0 %283  ;;  %v447_v13 = vand.u32 2147483647, %v445_v55 }
  0xce   : > { %v336_v28 = vsel %vm287_vm2, %v1210_v4, %v332_v25  ;;  %v289_v30 = vsel %vm287_vm2, %v1216_v6, %v284_v26  ;;  %v441_v54 = vand.u32 2147483647, %v439_v40 }
  0xcf   : > { %v338_v33 = vsub.f32 %v1210_v4, %v336_v28  ;;  %v291_v34 = vsub.f32 %v1216_v6, %v289_v30  ;;  %v351_v41 = vadd.f32 %v349_v63, %v339_v23  ;;  %v305_v42 = vadd.f32 %v303_v3, %v292_v24 }
  0xd0   : > { %v401_v6 = vand.u32 2147483647, %v399_v32 }
  0xd1   : > { %v340_v43 = vand.u32 2147483647, %v338_v33  ;;  %v293_v44 = vand.u32 2147483647, %v291_v34  ;;  %v378_v45 = vpop.permute.xlu1 %377  ;;  %v376_v46 = vpop.permute.xlu0 %375  ;;  %v357_v56 = vadd.f32 %v355_v59, %v351_v41  ;;  %v311_v57 = vadd.f32 %v309_v11, %v305_v42 }
  0xd2   : > { %v382_v4 = vsel %vm287_vm2, %v1222_v10, %v378_v45  ;;  %v381_v47 = vsel %vm287_vm2, %v1240_v21, %v376_v46 }
  0xd3   : > { %v352_v48 = vadd.f32 %v350_v17, %v340_v43  ;;  %v306_v49 = vadd.f32 %v304_v35, %v293_v44  ;;  %v384_v50 = vsub.f32 %v1222_v10, %v382_v4  ;;  %v383_v53 = vsub.f32 %v1240_v21, %v381_v47 }
  0xd4   : > { %v363_v16 = vadd.f32 %v357_v56, %v311_v57 }
  0xd5   : > { %v386_v58 = vand.u32 2147483647, %v384_v50  ;;  %v424_v61 = vpop.permute.xlu1 %423  ;;  %v422_v62 = vpop.permute.xlu0 %421  ;;  %v358_v63 = vadd.f32 %v356_v18, %v352_v48  ;;  %v385_v1 = vand.u32 2147483647, %v383_v53  ;;  %v312_v5 = vadd.f32 %v310_v36, %v306_v49 }
  0xd6   : > { %v428_v3 = vsel %vm287_vm2, %v1237_v19, %v424_v61  ;;  %v427_v10 = vsel %vm287_vm2, %v1246_v29, %v422_v62 }
  0xd7   : > { %v398_v7 = vadd.f32 %v396_v0, %v386_v58  ;;  %v430_v8 = vsub.f32 %v1237_v19, %v428_v3  ;;  %v429_v21 = vsub.f32 %v1246_v29, %v427_v10  ;;  %v397_v59 = vadd.f32 %v395_v52, %v385_v1 }
  0xd8   : > { %v364_v17 = vadd.f32 %v358_v63, %v312_v5 }
  0xd9   : > { %v404_v11 = vadd.f32 %v402_v37, %v398_v7  ;;  %v432_v12 = vand.u32 2147483647, %v430_v8  ;;  %v431_v14 = vand.u32 2147483647, %v429_v21  ;;  %v403_v15 = vadd.f32 %v401_v6, %v397_v59 }
  0xdb   : > { %v444_v18 = vadd.f32 %v442_v60, %v432_v12  ;;  %v443_v20 = vadd.f32 %v441_v54, %v431_v14  ;;  %v410_v22 = vadd.f32 %v404_v11, %v364_v17  ;;  %v409_v23 = vadd.f32 %v403_v15, %v363_v16 }
  0xdd   : > { %v450_v24 = vadd.f32 %v448_v9, %v444_v18  ;;  %v449_v25 = vadd.f32 %v447_v13, %v443_v20 }
  0xdf   : > { %v456_v26 = vadd.f32 %v450_v24, %v410_v22  ;;  %v455_v27 = vadd.f32 %v449_v25, %v409_v23 }
  0xe1   : > { %466 = vst.msk [vmem:[#allocation2 + $0x8] sm:$0xff] %vm270_vm0, %v456_v26  ;;  %465 = vst.msk [vmem:[#allocation2] sm:$0xff] %vm270_vm0, %v455_v27 }
  0xe8   : > { %v488_v19 = vld [vmem:[#allocation2] sm:$0xff]  ;;  %v489_v29 = vld [vmem:[#allocation2 + $0x8] sm:$0xff] }
  0xe9   : > { %v490_v2 = vsel %vm270_vm0, %v488_v19, 0.0  ;;  %v491_v28 = vsel %vm270_vm0, %v489_v29, 0.0 }
  0xea   : > { %v492_v30 = vadd.f32 %v491_v28, %v490_v2 }
  0xec   : > { %493 = vadd.xlane.f32.xlu0 %v492_v30 }
 0x114   : > { %v510_v31 = vpop.xlane.xlu1 %509 }
 0x115   : > { %v511_v32 = vrot.slane %v510_v31, 4 }
 0x117   : > { %v512_v33 = vadd.f32 %v511_v32, %v510_v31 }
 0x119   : > { %v513_v34 = vrot.slane %v512_v33, 2 }
 0x11b   : > { %v514_v38 = vadd.f32 %v513_v34, %v512_v33 }
 0x11d   : > { %v515_v41 = vrot.slane %v514_v38, 1 }
 0x11f   : > { %v516_v44 = vadd.f32 %v515_v41, %v514_v38 }
 0x179   : > { %v494_v35 = vpop.xlane.xlu0 %493 }
 0x17a   : > { %v495_v36 = vrot.slane %v494_v35, 4 }
 0x17c   : > { %v496_v37 = vadd.f32 %v495_v36, %v494_v35 }
 0x17e   : > { %v497_v39 = vrot.slane %v496_v37, 2 }
 0x180   : > { %v498_v40 = vadd.f32 %v497_v39, %v496_v37 }
 0x182   : > { %v499_v42 = vrot.slane %v498_v40, 1 }
 0x184   : > { %v500_v43 = vadd.f32 %v499_v42, %v498_v40 }
 0x186   : > { %726 = vpush %v500_v43 }
 0x187   : > { %728 = vpush %v516_v44 }
 0x1b7   : > { %s727_s10 = spop %726 }
 0x1b8   : > { %v502_v45 = vstv %s727_s10  ;;  %s729_s18 = spop %728 }
 0x1b9   : > { %503 = vst [vmem:[%s254_s6] sm:$0xff] %v502_v45  ;;  %v518_v46 = vstv %s729_s18 }
 0x1ba   : > { %519 = vst [vmem:[%s261_s23] sm:$0xff] %v518_v46 }
 0x1bb   : > { %878 = shalt.err (!%p875_p11)
}
 0x1bc   : > { %s879_s23 = scalar_lea.hbm %s1345_s30, 128  ;;  %s883_s5 = scalar_lea.hbm %s1423_s2, 256 }
 0x1bd   : > { %p880_p1 = scmp.ne.s32.totalorder %s1345_s30, %s879_s23  ;;  %p884_p5 = scmp.lt.u32.totalorder %s1345_s30, %s1423_s2 }
 0x1be   : > { %p885_p4 = scmp.lt.u32.totalorder %s883_s5, %s879_s23  ;;  %p887_p0 = scmp.lt.u32.totalorder %s879_s23, %s1345_s30 }
 0x1bf   : > { %p881_p6 = pnand %p880_p1, %p1435_p3 }
 0x1c0   : > { %p886_p8 = por %p885_p4, %p884_p5 }
 0x1c1   : > { %p882_p2 = pneg %p881_p6 }
 0x1c2   : > { %p888_p12 = por %p887_p0, %p886_p8 }
 0x1c4   : > { %p889_p13 = pnand %p888_p12, %p882_p2 }
 0x1c6   : > { %892 = shalt.err (!%p889_p13)
}
 0x1c7   : > { %734 = dma.vmem_to_hbm [thread:$0]  (%p1435_p3), %s1347_s22, 128, %s1345_s30, %s521_s28  }
 0x1c8   : > { %s526_s21 = scalar_lea.sflag [#allocation12], %s1180_s8  ;;  %s893_s15 = scalar_lea.vmem %s1340_s4, 128 }
 0x1c9   : > { %p894_p7 = scmp.ne.s32.totalorder %s1340_s4, %s893_s15  ;;  %s991_s11 = smov [#allocation11]  }
 0x1ca   : > { %s897_s19 = sshll.u32 %s991_s11, 4  ;;  %s898_s19 = int_to_ptr.vmem [resolvable:$false] %s897_s19 }
 0x1cb   : > { %p895_p10 = pnand %p894_p7, %p1435_p3  ;;  %s899_s24 = scalar_lea.vmem %s898_s19, 256 }
 0x1cc   : > { %p900_p11 = scmp.lt.s32.totalorder %s1340_s4, %s898_s19  ;;  %p901_p1 = scmp.lt.s32.totalorder %s899_s24, %s893_s15 }
 0x1cd   : > { %p896_p9 = pneg %p895_p10 }
 0x1ce   : > { %p902_p6 = por %p901_p1, %p900_p11 }
 0x1d0   : > { %p903_p2 = pnand %p902_p6, %p896_p9 }
 0x1d2   : > { %906 = shalt.err (!%p903_p2)
}
 0x1d3   : > { %s907_s8 = scalar_lea.hbm %s1352_s9, 128  ;;  %s911_s28 = scalar_lea.hbm %s1424_s3, 256 }
 0x1d4   : > { %p908_p5 = scmp.ne.s32.totalorder %s1352_s9, %s907_s8  ;;  %p912_p0 = scmp.lt.u32.totalorder %s1352_s9, %s1424_s3 }
 0x1d5   : > { %p913_p12 = scmp.lt.u32.totalorder %s911_s28, %s907_s8  ;;  %p915_p7 = scmp.lt.u32.totalorder %s907_s8, %s1352_s9 }
 0x1d6   : > { %p909_p4 = pnand %p908_p5, %p1435_p3 }
 0x1d7   : > { %p914_p13 = por %p913_p12, %p912_p0 }
 0x1d8   : > { %p910_p8 = pneg %p909_p4 }
 0x1d9   : > { %p916_p10 = por %p915_p7, %p914_p13 }
 0x1db   : > { %p917_p9 = pnand %p916_p10, %p910_p8 }
 0x1dd   : > { %920 = shalt.err (!%p917_p9)
}
 0x1de   : > { %735 = dma.vmem_to_hbm [thread:$0]  (%p1435_p3), %s1340_s4, 128, %s1352_s9, %s526_s21  }
 0x1df PF: > { %s564_s7 = sand.u32 1, %s963_s12   ;;  %p1436_p11 = scmp.ne.s32.totalorder %s1430_s27, 0 }
 0x1e0   : > { %p1437_p1 = scmp.ge.s32.totalorder %s983_s17, 2  ;;  %s565_s6 = scalar_lea.sflag [#allocation7], %s564_s7 }
 0x1e2   : > { %p746_p6 = pnand %p1437_p1, %p1436_p11 }
 0x1e4   : > { %954 = dma.done.wait (!%p746_p6), %s565_s6, 128  }
 0x1e5   : > { %956 = vsyncadd (!%p746_p6), %s565_s6, 4294967168  ;;  %s574_s5 = scalar_lea.sflag [#allocation12], %s564_s7 }
 0x1e6   : > { %958 = dma.done.wait (!%p746_p6), %s574_s5, 128  }
 0x1e7   : > { %960 = vsyncadd (!%p746_p6), %s574_s5, 4294967168  ;;  %s26_s17 = sadd.s32 1, %s983_s17   ;;  %s1438_s12 = smov %s967_s13 }
 0x1e8   : > { %p23_p2 = scmp.ge.s32.totalorder %s26_s17, 4   ;;  %s1439_s13 = smov %s971_s14 }
 0x1e9   : > { %s1440_s14 = smov %s1068_s26  ;;  %s1441_s15 = smov %s979_s16 }
 0x1ea   : > { %s1442_s16 = smov %s1444_s20  ;;  %25 = sbr.rel (!%p23_p2) target bundleno = 10 (0xa), region = 125 }
 0x1f1   :  { %579 = vsyncpa [#allocation6], 1 }
 0x1f2   :  { %581 = vsyncpa [#allocation6 + $0x1], 1 }
 0x1f3   :  { %582 = vsyncpa [#allocation9], 1 }
 0x1f4   :  { %584 = vsyncpa [#allocation9 + $0x1], 1 }
 0x1f5   :  { %585 = vsyncpa [#allocation7], 1 }
 0x1f6   :  { %587 = vsyncpa [#allocation7 + $0x1], 1 }
 0x1f7   :  { %588 = vsyncpa [#allocation12], 1 }
 0x1f8   :  { %590 = vsyncpa [#allocation12 + $0x1], 1 }

</bundles_post_ra>
